<compile_context>
chip_gen: v7x
topology: tpu7x:2x2x1
jax: 0.10.0
libtpu: 0.0.40
codegen_flags: <defaults>
</compile_context>

<pallas_src>
import functools

import jax
import jax.numpy as jnp
from jax.experimental import pallas as pl
from jax.experimental.pallas import tpu as pltpu

LN_EPS = 1e-12
CLS_PAD = 128   # lane-dense classifier output width


# --------------------------------------------------------------------------- helpers
def _ln(y, g, b, eps=LN_EPS):
    """f32 LayerNorm over the last axis. g/b are [1, H]."""
    mu = jnp.mean(y, axis=-1, keepdims=True)
    var = jnp.mean((y - mu) * (y - mu), axis=-1, keepdims=True)
    return (y - mu) * jax.lax.rsqrt(var + eps) * g + b


def _gelu_tanh(y):
    # TODO(synk): HF BERT uses exact erf-GELU; tanh approximation used for guaranteed
    # Mosaic lowering (difference ~1e-3).
    c = jnp.float32(0.7978845608028654)  # sqrt(2/pi)
    return 0.5 * y * (1.0 + jnp.tanh(c * (y + 0.044715 * y * y * y)))


# --------------------------------------------------------------------------- kernels
def _embed_ln_kernel(x_ref, g_ref, b_ref, o_ref):
    o_ref[...] = _ln(x_ref[...], g_ref[...], b_ref[...]).astype(o_ref.dtype)


def embed_layernorm(x, g, b):
    M, H = x.shape
    return pl.pallas_call(
        _embed_ln_kernel,
        out_shape=jax.ShapeDtypeStruct((M, H), jnp.float32),
        grid=(1,),
        in_specs=[pl.BlockSpec((M, H), lambda i: (0, 0)),
                  pl.BlockSpec((1, H), lambda i: (0, 0)),
                  pl.BlockSpec((1, H), lambda i: (0, 0))],
        out_specs=pl.BlockSpec((M, H), lambda i: (0, 0)),
    )(x, g, b)


def _qkv_kernel(x_ref, w_ref, b_ref, q_ref, k_ref, v_ref, *, B, S, dh, scale):
    """Per-head fused QKV projection; writes q/k/v already in head-major layout."""
    x = x_ref[...].astype(jnp.bfloat16)                       # [M, H]
    w = w_ref[0]                                              # [H, 3*dh] bf16
    y = jnp.dot(x, w, preferred_element_type=jnp.float32) + b_ref[0]   # [M, 3*dh] f32
    q = y[:, 0 * dh:1 * dh] * scale                           # fold 1/sqrt(dh) into q
    k = y[:, 1 * dh:2 * dh]
    v = y[:, 2 * dh:3 * dh]
    q_ref[...] = q.reshape(B, S, dh).astype(q_ref.dtype)
    k_ref[...] = k.reshape(B, S, dh).astype(k_ref.dtype)
    v_ref[...] = v.reshape(B, S, dh).astype(v_ref.dtype)


def qkv_proj(x, wqkv, bqkv, B, S, nH, dh, scale):
    M, H = x.shape
    out_sd = jax.ShapeDtypeStruct((nH * B, S, dh), jnp.bfloat16)
    head_spec = pl.BlockSpec((B, S, dh), lambda h: (h, 0, 0))
    return pl.pallas_call(
        functools.partial(_qkv_kernel, B=B, S=S, dh=dh, scale=scale),
        out_shape=(out_sd, out_sd, out_sd),
        grid=(nH,),
        in_specs=[pl.BlockSpec((M, H), lambda h: (0, 0)),
                  pl.BlockSpec((1, H, 3 * dh), lambda h: (h, 0, 0)),
                  pl.BlockSpec((1, 1, 3 * dh), lambda h: (h, 0, 0))],
        out_specs=(head_spec, head_spec, head_spec),
        compiler_params=pltpu.CompilerParams(dimension_semantics=("parallel",)),
    )(x, wqkv, bqkv)


def _attn_kernel(q_ref, k_ref, v_ref, m_ref, o_ref):
    """One (head, batch) attention tile. Scale already folded into q."""
    q = q_ref[0]                                              # [S, dh] bf16
    k = k_ref[0]
    v = v_ref[0]
    s = jax.lax.dot_general(q, k, (((1,), (1,)), ((), ())),
                            preferred_element_type=jnp.float32)        # [S, S] f32
    s = s + m_ref[0]                                          # additive mask [1, S]
    s = s - jnp.max(s, axis=-1, keepdims=True)
    p = jnp.exp(s)
    inv = pl.reciprocal(jnp.sum(p, axis=-1, keepdims=True), approx=True)
    ctx = jnp.dot(p.astype(v.dtype), v, preferred_element_type=jnp.float32) * inv
    o_ref[...] = ctx[None, :, :].astype(o_ref.dtype)


def attention(q, k, v, add_mask, nH, B):
    G, S, dh = q.shape                                        # G = nH * B (head-major)
    qkv_spec = pl.BlockSpec((1, S, dh), lambda h, b: (h * B + b, 0, 0))
    return pl.pallas_call(
        _attn_kernel,
        out_shape=jax.ShapeDtypeStruct((G, S, dh), jnp.bfloat16),
        grid=(nH, B),
        in_specs=[qkv_spec, qkv_spec, qkv_spec,
                  pl.BlockSpec((1, 1, S), lambda h, b: (b, 0, 0))],
        out_specs=qkv_spec,
        compiler_params=pltpu.CompilerParams(
            dimension_semantics=("parallel", "parallel")),
    )(q, k, v, add_mask)


def _attn_out_kernel(ctx_ref, wo_ref, bo_ref, res_ref, g_ref, b_ref, o_ref, acc_ref):
    """Output projection accumulated over heads, fused with residual + LayerNorm."""
    h = pl.program_id(0)

    @pl.when(h == 0)
    def _():
        acc_ref[...] = jnp.zeros_like(acc_ref)

    B, S, dh = ctx_ref.shape
    ctx = ctx_ref[...].reshape(B * S, dh)                     # bf16 [M, dh]
    acc_ref[...] += jnp.dot(ctx, wo_ref[0], preferred_element_type=jnp.float32)

    @pl.when(h == pl.num_programs(0) - 1)
    def _():
        y = acc_ref[...] + bo_ref[...] + res_ref[...]         # bias + residual (f32)
        o_ref[...] = _ln(y, g_ref[...], b_ref[...]).astype(o_ref.dtype)


def attn_out_ln(ctx, wo, bo, resid, g, b, nH):
    G, S, dh = ctx.shape
    B = G // nH
    M, H = resid.shape
    return pl.pallas_call(
        _attn_out_kernel,
        out_shape=jax.ShapeDtypeStruct((M, H), jnp.float32),
        grid=(nH,),
        in_specs=[pl.BlockSpec((B, S, dh), lambda h: (h, 0, 0)),
                  pl.BlockSpec((1, dh, H), lambda h: (h, 0, 0)),
                  pl.BlockSpec((1, H), lambda h: (0, 0)),
                  pl.BlockSpec((M, H), lambda h: (0, 0)),
                  pl.BlockSpec((1, H), lambda h: (0, 0)),
                  pl.BlockSpec((1, H), lambda h: (0, 0))],
        out_specs=pl.BlockSpec((M, H), lambda h: (0, 0)),
        scratch_shapes=[pltpu.VMEM((M, H), jnp.float32)],
        compiler_params=pltpu.CompilerParams(dimension_semantics=("arbitrary",)),
    )(ctx, wo, bo, resid, g, b)


def _ffn_kernel(x_ref, wi_ref, bi_ref, wo_ref, bo_ref, g_ref, b_ref, o_ref):
    """FFN (wi -> GELU -> wo2) fused with residual + LayerNorm; intermediate stays in VMEM."""
    x = x_ref[...]                                            # [tm, H] f32
    h1 = jnp.dot(x.astype(jnp.bfloat16), wi_ref[...],
                 preferred_element_type=jnp.float32) + bi_ref[...]
    h1 = _gelu_tanh(h1)                                       # f32 elementwise
    y = jnp.dot(h1.astype(jnp.bfloat16), wo_ref[...],
                preferred_element_type=jnp.float32) + bo_ref[...] + x
    o_ref[...] = _ln(y, g_ref[...], b_ref[...]).astype(o_ref.dtype)


def ffn_ln(x, wi, bi, wo2, bo2, g, b, tm=8):
    M, H = x.shape
    inter = wi.shape[1]
    tm = tm if (M % tm == 0) else M
    return pl.pallas_call(
        _ffn_kernel,
        out_shape=jax.ShapeDtypeStruct((M, H), jnp.float32),
        grid=(M // tm,),
        in_specs=[pl.BlockSpec((tm, H), lambda i: (i, 0)),
                  pl.BlockSpec((H, inter), lambda i: (0, 0)),   # weight resident over row tiles
                  pl.BlockSpec((1, inter), lambda i: (0, 0)),
                  pl.BlockSpec((inter, H), lambda i: (0, 0)),
                  pl.BlockSpec((1, H), lambda i: (0, 0)),
                  pl.BlockSpec((1, H), lambda i: (0, 0)),
                  pl.BlockSpec((1, H), lambda i: (0, 0))],
        out_specs=pl.BlockSpec((tm, H), lambda i: (i, 0)),
        compiler_params=pltpu.CompilerParams(dimension_semantics=("parallel",)),
    )(x, wi, bi, wo2, bo2, g, b)


def _cls_kernel(x_ref, w_ref, b_ref, o_ref):
    """Classifier + log_softmax on a lane-dense (padded to 128) label axis."""
    logits = jnp.dot(x_ref[...].astype(jnp.bfloat16), w_ref[...],
                     preferred_element_type=jnp.float32) + b_ref[...]
    logits = logits - jnp.max(logits, axis=-1, keepdims=True)
    o_ref[...] = (logits - jnp.log(jnp.sum(jnp.exp(logits), axis=-1,
                                           keepdims=True))).astype(o_ref.dtype)


def classifier_log_softmax(pooled, w_pad, b_pad):
    B, H = pooled.shape
    Np = w_pad.shape[1]
    return pl.pallas_call(
        _cls_kernel,
        out_shape=jax.ShapeDtypeStruct((B, Np), jnp.float32),
        grid=(1,),
        in_specs=[pl.BlockSpec((B, H), lambda i: (0, 0)),
                  pl.BlockSpec((H, Np), lambda i: (0, 0)),
                  pl.BlockSpec((1, Np), lambda i: (0, 0))],
        out_specs=pl.BlockSpec((B, Np), lambda i: (0, 0)),
    )(pooled, w_pad, b_pad)


# --------------------------------------------------------------------------- params
def init_params(key, *, vocab=100, max_pos=16, hidden=32, heads=4,
                layers=2, intermediate=64, num_labels=5):
    dh = hidden // heads
    ks = iter(jax.random.split(key, 8 + 8 * layers))

    def n01(shape, std=0.02):
        return (std * jax.random.normal(next(ks), shape)).astype(jnp.float32)

    params = {
        "num_heads": heads,
        "num_labels": num_labels,
        "word_emb": n01((vocab, hidden)),
        "pos_emb": n01((max_pos, hidden)),
        "tok_type_emb": n01((2, hidden)),
        "emb_ln_g": jnp.ones((1, hidden), jnp.float32),
        "emb_ln_b": jnp.zeros((1, hidden), jnp.float32),
        "layers": [],
    }

    def per_head(w):  # [H, H] -> [nH, H, dh] (columns of head h)
        return w.reshape(hidden, heads, dh).transpose(1, 0, 2)

    for _ in range(layers):
        wq, wk, wv = n01((hidden, hidden)), n01((hidden, hidden)), n01((hidden, hidden))
        wqkv = jnp.concatenate([per_head(wq), per_head(wk), per_head(wv)], axis=-1)
        wo = n01((hidden, hidden)).reshape(heads, dh, hidden)   # rows of head h
        params["layers"].append({
            "wqkv": wqkv.astype(jnp.bfloat16),                  # [nH, H, 3*dh]
            "bqkv": jnp.zeros((heads, 1, 3 * dh), jnp.float32),
            "wo": wo.astype(jnp.bfloat16),                      # [nH, dh, H]
            "bo": jnp.zeros((1, hidden), jnp.float32),
            "ln1_g": jnp.ones((1, hidden), jnp.float32),
            "ln1_b": jnp.zeros((1, hidden), jnp.float32),
            "wi": n01((hidden, intermediate)).astype(jnp.bfloat16),
            "bi": jnp.zeros((1, intermediate), jnp.float32),
            "wo2": n01((intermediate, hidden)).astype(jnp.bfloat16),
            "bo2": jnp.zeros((1, hidden), jnp.float32),
            "ln2_g": jnp.ones((1, hidden), jnp.float32),
            "ln2_b": jnp.zeros((1, hidden), jnp.float32),
        })

    # classifier: Linear(hidden, num_labels), xavier_normal_ weight, zero bias,
    # padded lane-dense to CLS_PAD; padded bias = -1e9 so padded logits vanish.
    xav_std = (2.0 / (hidden + num_labels)) ** 0.5
    cls_w = (xav_std * jax.random.normal(next(ks), (hidden, num_labels))).astype(jnp.float32)
    w_pad = jnp.zeros((hidden, CLS_PAD), jnp.float32).at[:, :num_labels].set(cls_w)
    b_pad = jnp.full((1, CLS_PAD), -1e9, jnp.float32).at[:, :num_labels].set(0.0)
    params["cls_w"] = w_pad.astype(jnp.bfloat16)
    params["cls_b"] = b_pad
    return params


# --------------------------------------------------------------------------- forward
def bert_sent_classifier_forward(params, input_ids, attention_mask):
    B, S = input_ids.shape
    H = params["word_emb"].shape[1]
    nH = params["num_heads"]
    dh = H // nH
    scale = float(dh) ** -0.5
    M = B * S

    # embeddings: gathers are plain-JAX glue; LayerNorm is Pallas. Dropout: eval -> identity.
    x = jnp.take(params["word_emb"], input_ids, axis=0)               # [B,S,H]
    x = x + params["pos_emb"][:S][None, :, :]
    x = x + params["tok_type_emb"][0][None, None, :]                  # token_type_ids == 0
    x = x.reshape(M, H).astype(jnp.float32)
    x = embed_layernorm(x, params["emb_ln_g"], params["emb_ln_b"])

    # additive mask (HF convention): 0 where attended, -10000 where masked; passed once, [B,1,S]
    add_mask = ((1.0 - attention_mask.astype(jnp.float32)) * -10000.0).reshape(B, 1, S)

    for layer in params["layers"]:
        q, k, v = qkv_proj(x, layer["wqkv"], layer["bqkv"], B, S, nH, dh, scale)
        ctx = attention(q, k, v, add_mask, nH, B)
        x = attn_out_ln(ctx, layer["wo"], layer["bo"], x,
                        layer["ln1_g"], layer["ln1_b"], nH)           # proj + residual + LN
        x = ffn_ln(x, layer["wi"], layer["bi"], layer["wo2"], layer["bo2"],
                   layer["ln2_g"], layer["ln2_b"])                    # FFN + residual + LN

    pooled = x.reshape(B, S, H)[:, 0, :]                              # CLS token; dropout: identity
    log_probs_pad = classifier_log_softmax(pooled, params["cls_w"], params["cls_b"])
    return log_probs_pad[:, :params["num_labels"]]                    # [B, num_labels]


# --------------------------------------------------------------------------- reference
def _ref_forward(params, input_ids, attention_mask):
    """Pure-jnp mirror of the kernel math (same bf16 boundaries) for validation."""
    B, S = input_ids.shape
    H = params["word_emb"].shape[1]
    nH = params["num_heads"]
    dh = H // nH
    scale = float(dh) ** -0.5
    M = B * S

    x = jnp.take(params["word_emb"], input_ids, axis=0)
    x = x + params["pos_emb"][:S][None] + params["tok_type_emb"][0][None, None]
    x = _ln(x.reshape(M, H).astype(jnp.float32), params["emb_ln_g"], params["emb_ln_b"])
    mask = (1.0 - attention_mask.astype(jnp.float32)) * -10000.0      # [B,S]

    for layer in params["layers"]:
        xb = x.astype(jnp.bfloat16)
        qkv = jnp.einsum("mh,nhd->nmd", xb, layer["wqkv"],
                         preferred_element_type=jnp.float32) + layer["bqkv"]
        q = (qkv[..., :dh] * scale).astype(jnp.bfloat16).reshape(nH, B, S, dh)
        k = qkv[..., dh:2 * dh].astype(jnp.bfloat16).reshape(nH, B, S, dh)
        v = qkv[..., 2 * dh:].astype(jnp.bfloat16).reshape(nH, B, S, dh)
        s = jnp.einsum("nbqd,nbkd->nbqk", q, k, preferred_element_type=jnp.float32)
        s = s + mask[None, :, None, :]
        p = jax.nn.softmax(s, axis=-1)
        ctx = jnp.einsum("nbqk,nbkd->nbqd", p.astype(jnp.bfloat16), v,
                         preferred_element_type=jnp.float32).astype(jnp.bfloat16)
        attn = jnp.einsum("nbsd,ndh->bsh", ctx, layer["wo"],
                          preferred_element_type=jnp.float32).reshape(M, H)
        x = _ln(attn + layer["bo"] + x, layer["ln1_g"], layer["ln1_b"])
        h1 = _gelu_tanh(jnp.dot(x.astype(jnp.bfloat16), layer["wi"],
                                preferred_element_type=jnp.float32) + layer["bi"])
        y = jnp.dot(h1.astype(jnp.bfloat16), layer["wo2"],
                    preferred_element_type=jnp.float32) + layer["bo2"] + x
        x = _ln(y, layer["ln2_g"], layer["ln2_b"])

    pooled = x.reshape(B, S, H)[:, 0, :]
    logits = jnp.dot(pooled.astype(jnp.bfloat16), params["cls_w"],
                     preferred_element_type=jnp.float32) + params["cls_b"]
    return jax.nn.log_softmax(logits, axis=-1)[:, :params["num_labels"]]


# --------------------------------------------------------------------------- main
if __name__ == "__main__":
    B, S = 2, 8
    VOCAB, HIDDEN, HEADS, LAYERS, INTER, LABELS, MAX_POS = 100, 32, 4, 2, 64, 5, 16

    key = jax.random.PRNGKey(0)
    k_param, k_ids = jax.random.split(key)
    params = init_params(k_param, vocab=VOCAB, max_pos=MAX_POS, hidden=HIDDEN,
                         heads=HEADS, layers=LAYERS, intermediate=INTER,
                         num_labels=LABELS)

    input_ids = jax.random.randint(k_ids, (B, S), 0, VOCAB, dtype=jnp.int32)
    attention_mask = jnp.ones((B, S), dtype=jnp.int32).at[1, 6:].set(0)  # pad tail of row 1

    out = bert_sent_classifier_forward(params, input_ids, attention_mask)
    out = jax.block_until_ready(out)

    assert out.shape == (B, LABELS)
    assert bool(jnp.all(jnp.isfinite(out)))
    # rows of log_softmax must exponentiate-sum to 1 (padded labels contribute ~0)
    assert jnp.allclose(jnp.exp(out).sum(-1), 1.0, atol=1e-4)

    ref = jax.block_until_ready(_ref_forward(params, input_ids, attention_mask))
    assert jnp.allclose(out, ref, atol=3e-2, rtol=3e-2)

    print("KERNEL_OK")
</pallas_src>

<mosaic_0001>
module attributes {stable_mosaic.version = 11 : i64} {
  func.func @_embed_ln_kernel(%arg0: i32, %arg1: memref<16x32xf32, #tpu.memory_space<vmem>>, %arg2: memref<1x32xf32, #tpu.memory_space<vmem>>, %arg3: memref<1x32xf32, #tpu.memory_space<vmem>>, %arg4: memref<16x32xf32, #tpu.memory_space<vmem>>) attributes {dimension_semantics = [#tpu.dimension_semantics<arbitrary>], iteration_bounds = array<i64: 1>, scalar_prefetch = 0 : i64, scratch_operands = 0 : i64, tpu.core_type = #tpu.core_type<tc>, window_params = [{pipeline_mode = #tpu.pipeline_mode<synchronous>, transform_indices = @transform_0, window_bounds = array<i64: 16, 32>}, {pipeline_mode = #tpu.pipeline_mode<synchronous>, transform_indices = @transform_1, window_bounds = array<i64: 1, 32>}, {pipeline_mode = #tpu.pipeline_mode<synchronous>, transform_indices = @transform_2, window_bounds = array<i64: 1, 32>}, {pipeline_mode = #tpu.pipeline_mode<synchronous>, transform_indices = @transform_3, window_bounds = array<i64: 16, 32>}]} {
    %c0 = arith.constant 0 : index
    %c0_0 = arith.constant 0 : index
    %0 = vector.load %arg1[%c0, %c0_0] : memref<16x32xf32, #tpu.memory_space<vmem>>, vector<16x32xf32>
    %c0_1 = arith.constant 0 : index
    %c0_2 = arith.constant 0 : index
    %1 = vector.load %arg2[%c0_1, %c0_2] : memref<1x32xf32, #tpu.memory_space<vmem>>, vector<1x32xf32>
    %c0_3 = arith.constant 0 : index
    %c0_4 = arith.constant 0 : index
    %2 = vector.load %arg3[%c0_3, %c0_4] : memref<1x32xf32, #tpu.memory_space<vmem>>, vector<1x32xf32>
    %cst = arith.constant dense<0.000000e+00> : vector<16xf32>
    %3 = vector.multi_reduction <add>, %0, %cst [1] : vector<16x32xf32> to vector<16xf32>
    %4 = vector.shape_cast %3 : vector<16xf32> to vector<16x1xf32>
    %cst_5 = arith.constant 3.200000e+01 : f32
    %5 = vector.broadcast %cst_5 : f32 to vector<16x1xf32>
    %6 = arith.divf %4, %5 : vector<16x1xf32>
    %7 = vector.broadcast %6 : vector<16x1xf32> to vector<16x32xf32>
    %8 = arith.subf %0, %7 : vector<16x32xf32>
    %9 = vector.broadcast %6 : vector<16x1xf32> to vector<16x32xf32>
    %10 = arith.subf %0, %9 : vector<16x32xf32>
    %11 = arith.mulf %8, %10 : vector<16x32xf32>
    %cst_6 = arith.constant dense<0.000000e+00> : vector<16xf32>
    %12 = vector.multi_reduction <add>, %11, %cst_6 [1] : vector<16x32xf32> to vector<16xf32>
    %13 = vector.shape_cast %12 : vector<16xf32> to vector<16x1xf32>
    %cst_7 = arith.constant 3.200000e+01 : f32
    %14 = vector.broadcast %cst_7 : f32 to vector<16x1xf32>
    %15 = arith.divf %13, %14 : vector<16x1xf32>
    %16 = vector.broadcast %6 : vector<16x1xf32> to vector<16x32xf32>
    %17 = arith.subf %0, %16 : vector<16x32xf32>
    %cst_8 = arith.constant 9.99999996E-13 : f32
    %18 = vector.broadcast %cst_8 : f32 to vector<16x1xf32>
    %19 = arith.addf %15, %18 : vector<16x1xf32>
    %20 = math.rsqrt %19 : vector<16x1xf32>
    %21 = vector.broadcast %20 : vector<16x1xf32> to vector<16x32xf32>
    %22 = arith.mulf %17, %21 : vector<16x32xf32>
    %23 = vector.broadcast %1 : vector<1x32xf32> to vector<16x32xf32>
    %24 = arith.mulf %22, %23 : vector<16x32xf32>
    %25 = vector.broadcast %2 : vector<1x32xf32> to vector<16x32xf32>
    %26 = arith.addf %24, %25 : vector<16x32xf32>
    %c0_9 = arith.constant 0 : index
    %c0_10 = arith.constant 0 : index
    %27 = vector.load %arg4[%c0_9, %c0_10] : memref<16x32xf32, #tpu.memory_space<vmem>>, vector<16x32xf32>
    tpu.vector_store %arg4[%c0_9, %c0_10], %26 {strides = array<i32>} : memref<16x32xf32, #tpu.memory_space<vmem>>, vector<16x32xf32>,
    return
  }
  func.func @transform_0(%arg0: i32) -> (i32, i32) {
    %c0_i32 = arith.constant 0 : i32
    %c0_i32_0 = arith.constant 0 : i32
    %c0_i32_1 = arith.constant 0 : i32
    return %c0_i32, %c0_i32_0 : i32, i32
  }
  func.func @transform_1(%arg0: i32) -> (i32, i32) {
    %c0_i32 = arith.constant 0 : i32
    %c0_i32_0 = arith.constant 0 : i32
    %c0_i32_1 = arith.constant 0 : i32
    return %c0_i32, %c0_i32_0 : i32, i32
  }
  func.func @transform_2(%arg0: i32) -> (i32, i32) {
    %c0_i32 = arith.constant 0 : i32
    %c0_i32_0 = arith.constant 0 : i32
    %c0_i32_1 = arith.constant 0 : i32
    return %c0_i32, %c0_i32_0 : i32, i32
  }
  func.func @transform_3(%arg0: i32) -> (i32, i32) {
    %c0_i32 = arith.constant 0 : i32
    %c0_i32_0 = arith.constant 0 : i32
    %c0_i32_1 = arith.constant 0 : i32
    return %c0_i32, %c0_i32_0 : i32, i32
  }
}

</mosaic_0001>

<bundles_post_ra>
// kernel: tpu_custom_call.1
= control target key start
LH: loop header
LB: loop body
LE: loop exit
PB: predicated region body
PF: predicated region fallthrough
CT: control target
= control target key end

     0   :  { %8 = vsyncpa [#allocation3], 0  ;;  %s220_s0 = inlined_call_operand.hbm [shape: f32[16,32], index: 0, kind: input, shape index: {}]   ;;  %s221_s1 = inlined_call_operand.vmem [shape: f32[1,32], index: 1, kind: input, shape index: {}]   ;;  %s222_s2 = inlined_call_operand.vmem [shape: f32[1,32], index: 2, kind: input, shape index: {}]   ;;  %s223_s3 = inlined_call_operand.hbm [shape: f32[16,32], index: 3, kind: output, shape index: {}]  }
   0x1   :  { %9 = vsyncpa [#allocation4], 0  ;;  %s154_s12 = smov [#allocation2]   ;;  %s106_s16 = scalar_lea.hbm %s220_s0, 256 }
   0x2   :  { %s15_s13 = sshll.u32 %s154_s12, 4  ;;  %p107_p0 = scmp.ne.s32.totalorder %s220_s0, %s106_s16  ;;  %s16_s13 = int_to_ptr.vmem [resolvable:$true] %s15_s13 }
   0x3   :  { %p110_p1 = scmp.lt.u32.totalorder %s106_s16, %s220_s0 }
   0x5   :  { %p112_p2 = pnand %p110_p1, %p107_p0 }
   0x7   :  { %115 = shalt.err (!%p112_p2)
}
   0x8   :  { %s116_s21 = scalar_lea.vmem %s16_s13, 256  ;;  %p121_p4 = scmp.lt.s32.totalorder %s16_s13, %s16_s13 }
   0x9   :  { %p117_p3 = scmp.ne.s32.totalorder %s16_s13, %s116_s21  ;;  %p122_p5 = scmp.lt.s32.totalorder %s116_s21, %s116_s21 }
   0xb   :  { %p123_p6 = por %p122_p5, %p121_p4 }
   0xd   :  { %p124_p7 = pnand %p123_p6, %p117_p3 }
   0xf   :  { %127 = shalt.err (!%p124_p7)
}
  0x10   :  { %s155_s22 = smov 128   ;;  %s156_s23 = smov 8  }
  0x11   :  { %21 = dma.hbm_to_vmem [thread:$0]  %s220_s0, 256, %s16_s13, [#allocation3], %s155_s22, %s155_s22, %s156_s23  }
  0x12   :  { %150 = dma.done.wait [#allocation3], 256  }
  0x13   :  { %151 = vsyncadd [#allocation3], 4294967040  ;;  %vm33_vm0 = vcmask 261120   ;;  %v29_v0 = vld [vmem:[#allocation2] sm:$0xff]  ;;  %v30_v1 = vld [vmem:[#allocation2 + $0x8] sm:$0xff]  ;;  %s157_s29 = smov [#allocation5]  }
  0x14   :  { %v34_v2 = vsel %vm33_vm0, %v29_v0, 0.0  ;;  %v37_v3 = vsel %vm33_vm0, %v30_v1, 0.0  ;;  %v96_v21 = vld [vmem:[%s221_s1] ss:$0 sm:$0xff]  ;;  %s84_s30 = sshll.u32 %s157_s29, 4  ;;  %s85_s30 = int_to_ptr.vmem [resolvable:$true] %s84_s30 }
  0x15   :  { %35 = vadd.xlane.f32.xlu0 %v34_v2  ;;  %v97_v23 = vld [vmem:[%s222_s2] ss:$0 sm:$0xff]  ;;  %s128_s4 = scalar_lea.vmem %s85_s30, 256  ;;  %p133_p9 = scmp.lt.s32.totalorder %s85_s30, %s85_s30 }
  0x16   :  { %p129_p8 = scmp.ne.s32.totalorder %s85_s30, %s128_s4  ;;  %p134_p10 = scmp.lt.s32.totalorder %s128_s4, %s128_s4 }
  0x18   :  { %p135_p11 = por %p134_p10, %p133_p9 }
  0x19   :  { %38 = vadd.xlane.f32.xlu0 %v37_v3 }
  0x1a   :  { %p136_p12 = pnand %p135_p11, %p129_p8 }
  0xa2   :  { %v36_v4 = vpop.xlane.xlu0 %35 }
  0xa3   :  { %v41_v5 = vmul.f32 0.03125, %v36_v4 }
  0xa5   :  { %v43_v6 = vsub.f32 %v29_v0, %v41_v5 }
  0xa6   :  { %v39_v7 = vpop.xlane.xlu0 %38 }
  0xa7   :  { %v42_v8 = vmul.f32 0.03125, %v39_v7  ;;  %v45_v9 = vmul.f32 %v43_v6, %v43_v6 }
  0xa9   :  { %v44_v10 = vsub.f32 %v30_v1, %v42_v8  ;;  %v47_v11 = vsel %vm33_vm0, %v45_v9, 0.0 }
  0xaa   :  { %48 = vadd.xlane.f32.xlu1 %v47_v11 }
  0xab   :  { %v46_v12 = vmul.f32 %v44_v10, %v44_v10 }
  0xad   :  { %v50_v13 = vsel %vm33_vm0, %v46_v12, 0.0 }
  0xae   :  { %51 = vadd.xlane.f32.xlu1 %v50_v13 }
 0x137   :  { %v49_v14 = vpop.xlane.xlu1 %48 }
 0x138   :  { %v53_v15 = vmul.f32 0.03125, %v49_v14 }
 0x13a   :  { %v55_v16 = vadd.f32 1e-12, %v53_v15 }
 0x13b   :  { %v52_v17 = vpop.xlane.xlu1 %51 }
 0x13c   :  { %102 = vrsqrt.f32 %v55_v16  ;;  %v54_v18 = vmul.f32 0.03125, %v52_v17 }
 0x13e   :  { %v56_v19 = vadd.f32 1e-12, %v54_v18 }
 0x140   :  { %104 = vrsqrt.f32 %v56_v19 }
 0x146   :  { %v103_v20 = vpop.eup %102 }
 0x147   :  { %v59_v22 = vmul.f32 %v103_v20, %v43_v6 }
 0x149   :  { %v67_v24 = vmul.f32 %v96_v21, %v59_v22 }
 0x14a   :  { %v105_v25 = vpop.eup %104 }
 0x14b   :  { %v60_v26 = vmul.f32 %v105_v25, %v44_v10  ;;  %v75_v27 = vadd.f32 %v97_v23, %v67_v24 }
 0x14d   :  { %v68_v28 = vmul.f32 %v96_v21, %v60_v26  ;;  %77 = vst.msk [vmem:[#allocation5] sm:$0xff] %vm33_vm0, %v75_v27 }
 0x14f   :  { %v76_v29 = vadd.f32 %v97_v23, %v68_v28 }
 0x151   :  { %78 = vst.msk [vmem:[#allocation5 + $0x8] sm:$0xff] %vm33_vm0, %v76_v29 }
 0x152   :  { %139 = shalt.err (!%p136_p12)
}
 0x153   :  { %s140_s5 = scalar_lea.hbm %s223_s3, 256 }
 0x154   :  { %p141_p13 = scmp.ne.s32.totalorder %s223_s3, %s140_s5  ;;  %p144_p0 = scmp.lt.u32.totalorder %s140_s5, %s223_s3 }
 0x156   :  { %p146_p1 = pnand %p144_p0, %p141_p13 }
 0x158   :  { %149 = shalt.err (!%p146_p1)
}
 0x159   :  { %90 = dma.vmem_to_hbm [thread:$0]  %s85_s30, 256, %s223_s3, [#allocation4], %s155_s22, %s155_s22, %s156_s23  }
 0x15a   :  { %152 = dma.done.wait [#allocation4], 256  }
 0x15b   :  { %153 = vsyncadd [#allocation4], 4294967040 }
 0x15c   :  { %94 = vsyncpa [#allocation3], 1 }
 0x15d   :  { %95 = vsyncpa [#allocation4], 1 }

</bundles_post_ra>
